<compile_context>
chip_gen: v7x
topology: tpu7x:2x2x1
jax: 0.10.0
libtpu: 0.0.40
codegen_flags: <defaults>
</compile_context>

<pallas_src>
import jax
import jax.numpy as jnp
from jax.experimental import pallas as pl
from jax.experimental.pallas import tpu as pltpu


def _round_up(x: int, m: int) -> int:
    return ((x + m - 1) // m) * m


# ---------------------------------------------------------------------------
# Kernel.
#   r0_ref:    (1, K)  f32 equilibrium values (VMEM-resident, reused per step)
#   khalf_ref: (K, 1)  f32 0.5 * force constants (the /2 is folded in)
#   u_ref:     (TN, K) row tile of U (streamed)
#   out_ref:   (TN, 1) f32 per-row potentials
# ---------------------------------------------------------------------------
def _bond_potential_kernel(r0_ref, khalf_ref, u_ref, out_ref):
    d = u_ref[...].astype(jnp.float32) - r0_ref[...]            # (TN, K), VPU
    # K-reduction on the MXU: (TN, K) @ (K, 1) -> (TN, 1), f32 accumulate.
    out_ref[...] = jnp.dot(d * d, khalf_ref[...],
                           preferred_element_type=jnp.float32)


def _pick_tile_n(n: int, K: int, itemsize: int) -> int:
    """Pick the row-tile size.

    Cap one input tile at ~8 MiB (f32 accounting, lanes padded to 128) so
    2 pipeline buffers + per-step intermediates fit the 48 MiB scoped VMEM
    budget with headroom. Single grid step if everything fits; otherwise
    prefer an even number of steps (v7x 2-TC sharding of the parallel axis).
    """
    lane_k = _round_up(max(K, 1), 128)
    bytes_per_row = lane_k * max(4, int(itemsize))
    cap_rows = max(8, ((8 * 1024 * 1024) // bytes_per_row) // 8 * 8)

    n8 = _round_up(max(n, 1), 8)
    if n8 <= cap_rows:
        return n8                                   # single grid step

    tile = cap_rows
    tiles = -(-n // tile)
    if tiles % 2 == 1:
        alt = _round_up(-(-n // (tiles + 1)), 8)
        if 8 <= alt <= cap_rows and (-(-n // alt)) % 2 == 0:
            tile = alt                              # even step count
    return tile


def bond_potential(U: jax.Array, bond_const: jax.Array) -> jax.Array:
    """Potential[i] = sum_j BondConst[0, j] * (U[i, j] - BondConst[1, j])**2 / 2.

    Returns a float32 (n, 1) array (f32 accumulation is kept in the output).
    """
    U = jnp.asarray(U)
    bond_const = jnp.asarray(bond_const)
    n, K = U.shape
    assert bond_const.shape == (2, K), bond_const.shape

    # Host-side constant prep (tiny): fold the /2 into the force constants.
    khalf = (bond_const[0, :].astype(jnp.float32) * 0.5).reshape(K, 1)  # (K, 1)
    r0 = bond_const[1, :].astype(jnp.float32).reshape(1, K)             # (1, K)

    tn = _pick_tile_n(n, K, U.dtype.itemsize)
    num_tiles = -(-n // tn)  # ceil; last block may be ragged (no jnp.pad copy)

    out = pl.pallas_call(
        _bond_potential_kernel,
        out_shape=jax.ShapeDtypeStruct((n, 1), jnp.float32),
        grid_spec=pltpu.PrefetchScalarGridSpec(
            num_scalar_prefetch=0,
            grid=(num_tiles,),
            in_specs=[
                pl.BlockSpec((1, K), lambda i: (0, 0)),   # r0, VMEM-resident
                pl.BlockSpec((K, 1), lambda i: (0, 0)),   # khalf, VMEM-resident
                pl.BlockSpec((tn, K), lambda i: (i, 0)),  # streamed row tiles
            ],
            out_specs=pl.BlockSpec((tn, 1), lambda i: (i, 0)),
        ),
        compiler_params=pltpu.CompilerParams(
            dimension_semantics=("parallel",),
            vmem_limit_bytes=48 * 1024 * 1024,
        ),
        cost_estimate=pl.CostEstimate(
            flops=4 * n * K,               # sub + square per elem + MXU dot
            transcendentals=0,
            bytes_accessed=n * K * U.dtype.itemsize + n * 4 + 8 * K,
        ),
    )(r0, khalf, U)
    return out


if __name__ == "__main__":
    key = jax.random.PRNGKey(0)
    k_u, k_k, k_r = jax.random.split(key, 3)

    n, K = 16, 32  # small synthetic shapes: n configurations, K bonds each

    # Deterministic synthetic parameters (no checkpoint load):
    # row 0: positive force constants, row 1: equilibrium bond values.
    force_const = jax.random.uniform(k_k, (K,), jnp.float32, minval=0.5, maxval=2.0)
    equilibrium = jax.random.uniform(k_r, (K,), jnp.float32, minval=-1.0, maxval=1.0)
    bond_const = jnp.stack([force_const, equilibrium], axis=0)  # (2, K)

    U = jax.random.normal(k_u, (n, K), jnp.float32)

    out = jax.block_until_ready(bond_potential(U, bond_const))

    # Reference check (pure JAX, mirrors the PyTorch forward exactly).
    ref = jnp.sum(bond_const[0, :] * (U - bond_const[1, :]) ** 2, axis=1).reshape(n, 1) / 2
    assert out.shape == (n, 1), out.shape
    assert jnp.allclose(out, ref, rtol=1e-5, atol=1e-5), "mismatch vs reference"

    print("KERNEL_OK")
</pallas_src>

<mosaic_0001>
module attributes {stable_mosaic.version = 11 : i64} {
  func.func @_bond_potential_kernel(%arg0: i32, %arg1: memref<1x32xf32, #tpu.memory_space<vmem>>, %arg2: memref<32x1xf32, #tpu.memory_space<vmem>>, %arg3: memref<16x32xf32, #tpu.memory_space<vmem>>, %arg4: memref<16x1xf32, #tpu.memory_space<vmem>>) attributes {dimension_semantics = [#tpu.dimension_semantics<parallel>], iteration_bounds = array<i64: 1>, scalar_prefetch = 0 : i64, scratch_operands = 0 : i64, tpu.core_type = #tpu.core_type<tc>, window_params = [{pipeline_mode = #tpu.pipeline_mode<synchronous>, transform_indices = @transform_0, window_bounds = array<i64: 1, 32>}, {pipeline_mode = #tpu.pipeline_mode<synchronous>, transform_indices = @transform_1, window_bounds = array<i64: 32, 1>}, {transform_indices = @transform_2, window_bounds = array<i64: 16, 32>}, {transform_indices = @transform_3, window_bounds = array<i64: 16, 1>}]} {
    %c0 = arith.constant 0 : index
    %c0_0 = arith.constant 0 : index
    %0 = vector.load %arg3[%c0, %c0_0] : memref<16x32xf32, #tpu.memory_space<vmem>>, vector<16x32xf32>
    %c0_1 = arith.constant 0 : index
    %c0_2 = arith.constant 0 : index
    %1 = vector.load %arg1[%c0_1, %c0_2] : memref<1x32xf32, #tpu.memory_space<vmem>>, vector<1x32xf32>
    %2 = vector.broadcast %1 : vector<1x32xf32> to vector<16x32xf32>
    %3 = arith.subf %0, %2 : vector<16x32xf32>
    %4 = arith.mulf %3, %3 : vector<16x32xf32>
    %c0_3 = arith.constant 0 : index
    %c0_4 = arith.constant 0 : index
    %5 = vector.load %arg2[%c0_3, %c0_4] : memref<32x1xf32, #tpu.memory_space<vmem>>, vector<32x1xf32>
    %cst = arith.constant dense<0.000000e+00> : vector<16x1xf32>
    %6 = tpu.matmul %4, %5, %cst {dimension_numbers = #tpu.dot_dimension_numbers<[1], [0], [0], [1], [0, 0, 1, 1], [], []>} : vector<16x32xf32>, vector<32x1xf32>, vector<16x1xf32> -> vector<16x1xf32>
    %c0_5 = arith.constant 0 : index
    %c0_6 = arith.constant 0 : index
    %7 = vector.load %arg4[%c0_5, %c0_6] : memref<16x1xf32, #tpu.memory_space<vmem>>, vector<16x1xf32>
    tpu.vector_store %arg4[%c0_5, %c0_6], %6 {strides = array<i32>} : memref<16x1xf32, #tpu.memory_space<vmem>>, vector<16x1xf32>,
    return
  }
  func.func @transform_0(%arg0: i32) -> (i32, i32) {
    %c0_i32 = arith.constant 0 : i32
    %c0_i32_0 = arith.constant 0 : i32
    %c0_i32_1 = arith.constant 0 : i32
    return %c0_i32, %c0_i32_0 : i32, i32
  }
  func.func @transform_1(%arg0: i32) -> (i32, i32) {
    %c0_i32 = arith.constant 0 : i32
    %c0_i32_0 = arith.constant 0 : i32
    %c0_i32_1 = arith.constant 0 : i32
    return %c0_i32, %c0_i32_0 : i32, i32
  }
  func.func @transform_2(%arg0: i32) -> (i32, i32) {
    %c0_i32 = arith.constant 0 : i32
    %c0_i32_0 = arith.constant 0 : i32
    return %arg0, %c0_i32 : i32, i32
  }
  func.func @transform_3(%arg0: i32) -> (i32, i32) {
    %c0_i32 = arith.constant 0 : i32
    %c0_i32_0 = arith.constant 0 : i32
    return %arg0, %c0_i32 : i32, i32
  }
}

</mosaic_0001>

<bundles_post_ra>
// kernel: tpu_custom_call.1
= control target key start
LH: loop header
LB: loop body
LE: loop exit
PB: predicated region body
PF: predicated region fallthrough
CT: control target
= control target key end

     0   :  { %vm31_vm0 = vcmask 261120   ;;  %vm113_vm1 = vcmask 7168   ;;  %s195_s1 = inlined_call_operand.vmem [shape: f32[32,1], index: 1, kind: input, shape index: {}]   ;;  %s196_s0 = inlined_call_operand.vmem [shape: f32[1,32], index: 0, kind: input, shape index: {}]   ;;  %s197_s2 = inlined_call_operand.vmem [shape: f32[16,32], index: 2, kind: input, shape index: {}]   ;;  %s198_s3 = inlined_call_operand.vmem [shape: f32[16,1], index: 3, kind: output, shape index: {}]  }
   0x1   :  { %v27_v0 = vld [vmem:[%s195_s1] sm:$0xff]  ;;  %v28_v1 = vld [vmem:[%s195_s1 + $0x8] sm:$0xff]  ;;  %v29_v2 = vld [vmem:[%s195_s1 + $0x10] sm:$0xff] }
   0x2   :  { %v140_v3 = vpack.c.bf16 %v28_v1, %v27_v0  ;;  %v30_v4 = vld [vmem:[%s195_s1 + $0x18] sm:$0xff]  ;;  %v14_v5 = vld [vmem:[%s197_s2] sm:$0xff]  ;;  %v15_v6 = vld [vmem:[%s197_s2 + $0x8] sm:$0xff] }
   0x3   :  { %v144_v7 = vpack.c.bf16 %v30_v4, %v29_v2  ;;  %v120_v8 = vld [vmem:[%s196_s0] ss:$0 sm:$0xff] }
   0x4   :  { %141 = vmatprep.subr.bf16.mxu0 %v140_v3  ;;  %v23_v9 = vsub.f32 %v14_v5, %v120_v8  ;;  %v24_v10 = vsub.f32 %v15_v6, %v120_v8 }
   0x5   :  { %143 = vmatpush3.bf16.msra.mxu0 %v140_v3 }
   0x6   :  { %145 = vmatprep.subr.bf16.mxu0 %v144_v7  ;;  %v25_v11 = vmul.f32 %v23_v9, %v23_v9  ;;  %v26_v12 = vmul.f32 %v24_v10, %v24_v10 }
   0x8   :  { %137 = vmatprep.mubr.msk.f32.mxu0 %vm31_vm0, %v25_v11 }
   0x9   :  { %147 = vmatpush3.bf16.msra.mxu0 %v144_v7 }
   0xc   :  { %138 = vmatmul.mubr.msk.f32.vlgmr.msra.gmra.mrb[0].mxu0 %vm31_vm0, %v26_v12 }
  0xdf   :  { %v139_v13 = vpop.f32.mrb[0].mxu0 }
  0xe0   :  { %115 = vst.msk [vmem:[%s198_s3 + $0x8] sm:$0xff] %vm113_vm1, %v139_v13  ;;  %v104_v14 = vpop.f32.mrb[1].mxu0 }
  0xe1   :  { %114 = vst.msk [vmem:[%s198_s3] sm:$0xff] %vm113_vm1, %v104_v14 }

</bundles_post_ra>
